<compile_context>
chip_gen: v5e
topology: v5e:2x2
jax: 0.10.0
libtpu: 0.0.40
codegen_flags: <defaults>
</compile_context>

<pallas_src>
import jax
import jax.numpy as jnp
from jax.experimental import pallas as pl
from jax.experimental.pallas import tpu as pltpu

_IN_FEATURES = 4
_H1 = 32
_LANES = 128


def _round_up(x, m):
    return (x + m - 1) // m * m


def _weight_layout(hidden, num_actions):
    """Row offsets of w1T / w2T / w3T inside the packed weight slab.

    Sections start on multiples of 16 rows so static in-kernel slices stay
    aligned to the bf16 (16, 128) native tile (also valid for f32 (8, 128)).
    """
    assert max(_H1, hidden, num_actions) <= _LANES, "feature dims must fit in 128 lanes"
    off = {}
    off["w1T"] = 0                                       # (32, 4)
    off["w2T"] = _round_up(off["w1T"] + _H1, 16)         # (hidden, 32)
    off["w3T"] = _round_up(off["w2T"] + hidden, 16)      # (num_actions, hidden)
    rows = _round_up(off["w3T"] + num_actions, 16)
    return off, rows


def _bias_layout(hidden, num_actions):
    """Row offsets of the f32 bias columns inside the bias slab (8-aligned)."""
    off = {}
    off["b1"] = 0                                        # (32, 1)
    off["b2"] = _round_up(off["b1"] + _H1, 8)            # (hidden, 1)
    off["b3"] = _round_up(off["b2"] + hidden, 8)         # (num_actions, 1)
    rows = _round_up(off["b3"] + num_actions, 8)
    return off, rows


def pack_params(params, *, hidden_layer_size, num_actions, use_bf16=True):
    """Pack transposed weights (bf16 by default) and f32 biases into two slabs.

    Done once outside the kernel; the slabs stay VMEM-resident across grid steps.
    """
    h, a = hidden_layer_size, num_actions
    wdt = jnp.bfloat16 if use_bf16 else jnp.float32

    w_off, w_rows = _weight_layout(h, a)
    w_slab = jnp.zeros((w_rows, _LANES), wdt)
    w_slab = w_slab.at[w_off["w1T"]:w_off["w1T"] + _H1, :_IN_FEATURES].set(
        params["w1"].T.astype(wdt))
    w_slab = w_slab.at[w_off["w2T"]:w_off["w2T"] + h, :_H1].set(
        params["w2"].T.astype(wdt))
    w_slab = w_slab.at[w_off["w3T"]:w_off["w3T"] + a, :h].set(
        params["w3"].T.astype(wdt))

    b_off, b_rows = _bias_layout(h, a)
    b_slab = jnp.zeros((b_rows, _LANES), jnp.float32)
    b_slab = b_slab.at[b_off["b1"]:b_off["b1"] + _H1, 0:1].set(
        params["b1"].reshape(-1, 1))
    b_slab = b_slab.at[b_off["b2"]:b_off["b2"] + h, 0:1].set(
        params["b2"].reshape(-1, 1))
    b_slab = b_slab.at[b_off["b3"]:b_off["b3"] + a, 0:1].set(
        params["b3"].reshape(-1, 1))
    return w_slab, b_slab


def _make_kernel(hidden, num_actions, use_bf16):
    w_off, _ = _weight_layout(hidden, num_actions)
    b_off, _ = _bias_layout(hidden, num_actions)
    cdt = jnp.bfloat16 if use_bf16 else jnp.float32

    def kernel(xT_ref, w_ref, b_ref, outT_ref):
        # (4, TB) batch-in-lanes tile of states (lane-dense: TB % 128 == 0).
        xT = xT_ref[...].astype(cdt)

        # Static, section-aligned views of the VMEM-resident parameter slabs.
        w1T = w_ref[w_off["w1T"]:w_off["w1T"] + _H1, :_IN_FEATURES]       # (32, 4)
        w2T = w_ref[w_off["w2T"]:w_off["w2T"] + hidden, :_H1]             # (H, 32)
        w3T = w_ref[w_off["w3T"]:w_off["w3T"] + num_actions, :hidden]     # (A, H)
        b1 = b_ref[b_off["b1"]:b_off["b1"] + _H1, 0:1]                    # (32, 1)
        b2 = b_ref[b_off["b2"]:b_off["b2"] + hidden, 0:1]                 # (H, 1)
        b3 = b_ref[b_off["b3"]:b_off["b3"] + num_actions, 0:1]            # (A, 1)

        # All three layers on the (otherwise idle) MXU, f32 accumulation.
        # fc1: (32, 4) @ (4, TB)  -- tiny contraction, but it frees the
        # VALU/XLU slots that carry the ReLUs / bias adds / casts.
        h1 = jnp.dot(w1T, xT, preferred_element_type=jnp.float32)         # (32, TB)
        h1 = jnp.maximum(h1 + b1, 0.0)

        h2 = jnp.dot(w2T, h1.astype(cdt), preferred_element_type=jnp.float32)
        h2 = jnp.maximum(h2 + b2, 0.0)                                    # (H, TB)

        qT = jnp.dot(w3T, h2.astype(cdt), preferred_element_type=jnp.float32)
        outT_ref[...] = (qT + b3).astype(outT_ref.dtype)                  # (A, TB)

    return kernel


def _choose_tile(batch, block_batch):
    """Pick a lane-dense (multiple-of-128) batch tile and grid size."""
    bp = max(_round_up(batch, _LANES), _LANES)
    n_tiles = pl.cdiv(bp, block_batch)
    if bp > _LANES:
        n_tiles = max(2, n_tiles)     # keep both v7x TensorCores busy
        n_tiles += n_tiles % 2        # even tile count -> balanced split
    tb = _round_up(pl.cdiv(bp, n_tiles), _LANES)
    grid_n = pl.cdiv(bp, tb)
    return tb, grid_n, tb * grid_n


def dqn_forward(states, packed_params, *, num_actions, hidden_layer_size=50,
                block_batch=16384, use_bf16=True):
    """Fused DQN forward: relu(relu(x@W1+b1)@W2+b2)@W3+b3.

    Args:
      states:        f32[B, 4]
      packed_params: output of pack_params() -> (weight_slab, bias_slab)
    Returns:
      q_values: f32[B, num_actions]
    """
    w_slab, b_slab = packed_params
    B, F = states.shape
    assert F == _IN_FEATURES

    tb, grid_n, b_pad = _choose_tile(B, block_batch)

    # Transposed, lane-dense layout; explicit zero padding so no grid block
    # computes on unspecified rows.
    xT = jnp.zeros((_IN_FEATURES, b_pad), jnp.float32).at[:, :B].set(states.T)

    kernel = _make_kernel(hidden_layer_size, num_actions, use_bf16)
    w_rows, w_cols = w_slab.shape
    b_rows, b_cols = b_slab.shape

    flops = 2 * B * (_IN_FEATURES * _H1 + _H1 * hidden_layer_size
                     + hidden_layer_size * num_actions)
    bytes_accessed = (B * (_IN_FEATURES + num_actions) * 4
                      + w_slab.size * w_slab.dtype.itemsize
                      + b_slab.size * 4)

    qT = pl.pallas_call(
        kernel,
        out_shape=jax.ShapeDtypeStruct((num_actions, b_pad), jnp.float32),
        grid=(grid_n,),
        in_specs=[
            # Batch-tiled, lane-dense states (4 sublanes x TB lanes).
            pl.BlockSpec((_IN_FEATURES, tb), lambda i: (0, i)),
            # VMEM-resident parameter slabs (constant index_map -> fetched once).
            pl.BlockSpec((w_rows, w_cols), lambda i: (0, 0)),
            pl.BlockSpec((b_rows, b_cols), lambda i: (0, 0)),
        ],
        # Lane-dense output: (num_actions, TB) with TB % 128 == 0.
        out_specs=pl.BlockSpec((num_actions, tb), lambda i: (0, i)),
        compiler_params=pltpu.CompilerParams(
            # Batch tiles are independent -> shard across TCs on v7x megacore.
            dimension_semantics=("parallel",),
            # Explicit scoped-VMEM budget; lane-dense tiles use ~12 MiB at the
            # default block_batch, safe on v5e/v6e/v7x.
            vmem_limit_bytes=32 * 1024 * 1024,
        ),
        cost_estimate=pl.CostEstimate(flops=flops, transcendentals=0,
                                      bytes_accessed=bytes_accessed),
    )(xT, w_slab, b_slab)

    # Un-transpose and strip the lane padding in the wrapper.
    return qT[:, :B].T


def init_params(key, num_actions, hidden_layer_size=50, input_state=4):
    """PyTorch nn.Linear-style init: U(-1/sqrt(fan_in), +1/sqrt(fan_in))."""
    def linear(key, fan_in, fan_out):
        kw, kb = jax.random.split(key)
        bound = 1.0 / jnp.sqrt(fan_in)
        w = jax.random.uniform(kw, (fan_in, fan_out), jnp.float32,
                               minval=-bound, maxval=bound)
        b = jax.random.uniform(kb, (1, fan_out), jnp.float32,
                               minval=-bound, maxval=bound)
        return w, b

    k1, k2, k3 = jax.random.split(key, 3)
    w1, b1 = linear(k1, input_state, _H1)
    w2, b2 = linear(k2, _H1, hidden_layer_size)
    w3, b3 = linear(k3, hidden_layer_size, num_actions)
    return {"w1": w1, "b1": b1, "w2": w2, "b2": b2, "w3": w3, "b3": b3}


def _reference_forward(states, p):
    hp = jax.lax.Precision.HIGHEST
    h1 = jnp.maximum(jnp.dot(states, p["w1"], precision=hp) + p["b1"], 0.0)
    h2 = jnp.maximum(jnp.dot(h1, p["w2"], precision=hp) + p["b2"], 0.0)
    return jnp.dot(h2, p["w3"], precision=hp) + p["b3"]


if __name__ == "__main__":
    key = jax.random.PRNGKey(0)
    k_param, k_state = jax.random.split(key)

    batch = 2
    num_actions = 2
    hidden = 50

    params = init_params(k_param, num_actions, hidden_layer_size=hidden)
    states = jax.random.normal(k_state, (batch, _IN_FEATURES), jnp.float32)
    ref = _reference_forward(states, params)

    # f32 path at the module's natural tiny batch (single 128-lane tile).
    slabs_f32 = pack_params(params, hidden_layer_size=hidden,
                            num_actions=num_actions, use_bf16=False)
    q_f32 = jax.block_until_ready(
        dqn_forward(states, slabs_f32, num_actions=num_actions,
                    hidden_layer_size=hidden, use_bf16=False))
    assert q_f32.shape == (batch, num_actions)
    assert jnp.allclose(q_f32, ref, atol=1e-2, rtol=1e-2)

    # Default bf16-weight path (recommended on v5e/v6e/v7x), f32 accumulation.
    slabs_bf16 = pack_params(params, hidden_layer_size=hidden,
                             num_actions=num_actions, use_bf16=True)
    q_bf16 = jax.block_until_ready(
        dqn_forward(states, slabs_bf16, num_actions=num_actions,
                    hidden_layer_size=hidden))
    assert q_bf16.shape == (batch, num_actions)
    assert jnp.allclose(q_bf16, ref, atol=5e-2, rtol=5e-2)

    # Larger, non-multiple-of-128 batch: exercises the lane-dense multi-tile
    # grid (even tile count for 2 TCs), the zero padding, and the resident
    # parameter slabs across grid steps.
    big_states = jax.random.normal(jax.random.PRNGKey(1),
                                   (4097, _IN_FEATURES), jnp.float32)
    ref_big = _reference_forward(big_states, params)
    q_big = jax.block_until_ready(
        dqn_forward(big_states, slabs_f32, num_actions=num_actions,
                    hidden_layer_size=hidden, use_bf16=False,
                    block_batch=2048))
    assert q_big.shape == (4097, num_actions)
    assert jnp.allclose(q_big, ref_big, atol=1e-2, rtol=1e-2)

    print("KERNEL_OK")
</pallas_src>

<mosaic_0001>
module attributes {stable_mosaic.version = 11 : i64} {
  func.func @kernel(%arg0: i32, %arg1: memref<4x128xf32, #tpu.memory_space<vmem>>, %arg2: memref<112x128xf32, #tpu.memory_space<vmem>>, %arg3: memref<96x128xf32, #tpu.memory_space<vmem>>, %arg4: memref<2x128xf32, #tpu.memory_space<vmem>>) attributes {dimension_semantics = [#tpu.dimension_semantics<parallel>], iteration_bounds = array<i64: 1>, scalar_prefetch = 0 : i64, scratch_operands = 0 : i64, tpu.core_type = #tpu.core_type<tc>, window_params = [{transform_indices = @transform_0, window_bounds = array<i64: 4, 128>}, {pipeline_mode = #tpu.pipeline_mode<synchronous>, transform_indices = @transform_1, window_bounds = array<i64: 112, 128>}, {pipeline_mode = #tpu.pipeline_mode<synchronous>, transform_indices = @transform_2, window_bounds = array<i64: 96, 128>}, {transform_indices = @transform_3, window_bounds = array<i64: 2, 128>}]} {
    %c0 = arith.constant 0 : index
    %c0_0 = arith.constant 0 : index
    %0 = vector.load %arg1[%c0, %c0_0] : memref<4x128xf32, #tpu.memory_space<vmem>>, vector<4x128xf32>
    %c0_1 = arith.constant 0 : index
    %c0_2 = arith.constant 0 : index
    %1 = vector.load %arg2[%c0_1, %c0_2] : memref<112x128xf32, #tpu.memory_space<vmem>>, vector<32x4xf32>
    %c32 = arith.constant 32 : index
    %c0_3 = arith.constant 0 : index
    %2 = vector.load %arg2[%c32, %c0_3] : memref<112x128xf32, #tpu.memory_space<vmem>>, vector<50x32xf32>
    %c96 = arith.constant 96 : index
    %c0_4 = arith.constant 0 : index
    %3 = vector.load %arg2[%c96, %c0_4] : memref<112x128xf32, #tpu.memory_space<vmem>>, vector<2x50xf32>
    %c0_5 = arith.constant 0 : index
    %c0_6 = arith.constant 0 : index
    %4 = vector.load %arg3[%c0_5, %c0_6] : memref<96x128xf32, #tpu.memory_space<vmem>>, vector<32x1xf32>
    %c32_7 = arith.constant 32 : index
    %c0_8 = arith.constant 0 : index
    %5 = vector.load %arg3[%c32_7, %c0_8] : memref<96x128xf32, #tpu.memory_space<vmem>>, vector<50x1xf32>
    %c88 = arith.constant 88 : index
    %c0_9 = arith.constant 0 : index
    %6 = vector.load %arg3[%c88, %c0_9] : memref<96x128xf32, #tpu.memory_space<vmem>>, vector<2x1xf32>
    %cst = arith.constant dense<0.000000e+00> : vector<32x128xf32>
    %7 = tpu.matmul %1, %0, %cst {dimension_numbers = #tpu.dot_dimension_numbers<[1], [0], [0], [1], [0, 0, 1, 1], [], []>} : vector<32x4xf32>, vector<4x128xf32>, vector<32x128xf32> -> vector<32x128xf32>
    %8 = vector.broadcast %4 : vector<32x1xf32> to vector<32x128xf32>
    %9 = arith.addf %7, %8 : vector<32x128xf32>
    %cst_10 = arith.constant 0.000000e+00 : f32
    %10 = vector.broadcast %cst_10 : f32 to vector<32x128xf32>
    %11 = arith.maximumf %9, %10 : vector<32x128xf32>
    %cst_11 = arith.constant dense<0.000000e+00> : vector<50x128xf32>
    %12 = tpu.matmul %2, %11, %cst_11 {dimension_numbers = #tpu.dot_dimension_numbers<[1], [0], [0], [1], [0, 0, 1, 1], [], []>} : vector<50x32xf32>, vector<32x128xf32>, vector<50x128xf32> -> vector<50x128xf32>
    %13 = vector.broadcast %5 : vector<50x1xf32> to vector<50x128xf32>
    %14 = arith.addf %12, %13 : vector<50x128xf32>
    %cst_12 = arith.constant 0.000000e+00 : f32
    %15 = vector.broadcast %cst_12 : f32 to vector<50x128xf32>
    %16 = arith.maximumf %14, %15 : vector<50x128xf32>
    %cst_13 = arith.constant dense<0.000000e+00> : vector<2x128xf32>
    %17 = tpu.matmul %3, %16, %cst_13 {dimension_numbers = #tpu.dot_dimension_numbers<[1], [0], [0], [1], [0, 0, 1, 1], [], []>} : vector<2x50xf32>, vector<50x128xf32>, vector<2x128xf32> -> vector<2x128xf32>
    %18 = vector.broadcast %6 : vector<2x1xf32> to vector<2x128xf32>
    %19 = arith.addf %17, %18 : vector<2x128xf32>
    %c0_14 = arith.constant 0 : index
    %c0_15 = arith.constant 0 : index
    %20 = vector.load %arg4[%c0_14, %c0_15] : memref<2x128xf32, #tpu.memory_space<vmem>>, vector<2x128xf32>
    tpu.vector_store %arg4[%c0_14, %c0_15], %19 {strides = array<i32>} : memref<2x128xf32, #tpu.memory_space<vmem>>, vector<2x128xf32>,
    return
  }
  func.func @transform_0(%arg0: i32) -> (i32, i32) {
    %c0_i32 = arith.constant 0 : i32
    %c0_i32_0 = arith.constant 0 : i32
    return %c0_i32, %arg0 : i32, i32
  }
  func.func @transform_1(%arg0: i32) -> (i32, i32) {
    %c0_i32 = arith.constant 0 : i32
    %c0_i32_0 = arith.constant 0 : i32
    %c0_i32_1 = arith.constant 0 : i32
    return %c0_i32, %c0_i32_0 : i32, i32
  }
  func.func @transform_2(%arg0: i32) -> (i32, i32) {
    %c0_i32 = arith.constant 0 : i32
    %c0_i32_0 = arith.constant 0 : i32
    %c0_i32_1 = arith.constant 0 : i32
    return %c0_i32, %c0_i32_0 : i32, i32
  }
  func.func @transform_3(%arg0: i32) -> (i32, i32) {
    %c0_i32 = arith.constant 0 : i32
    %c0_i32_0 = arith.constant 0 : i32
    return %c0_i32, %arg0 : i32, i32
  }
}

</mosaic_0001>

<bundles_post_ra>
// kernel: tpu_custom_call.1
= control target key start
LH: loop header
LB: loop body
LE: loop exit
PB: predicated region body
PF: predicated region fallthrough
CT: control target
= control target key end

     0   :  { %8 = vsyncpa [#allocation3], 0  ;;  %s489_s0 = inlined_call_operand.hbm [shape: f32[4,128], index: 0, kind: input, shape index: {}]   ;;  %s490_s1 = inlined_call_operand.hbm [shape: f32[112,128], index: 1, kind: input, shape index: {}]   ;;  %s491_s2 = inlined_call_operand.hbm [shape: f32[96,128], index: 2, kind: input, shape index: {}]   ;;  %s492_s3 = inlined_call_operand.hbm [shape: f32[2,128], index: 3, kind: output, shape index: {}]  }
   0x1   :  { %9 = vsyncpa [#allocation6], 0  ;;  %s26_s14 = sshll.u32 %s490_s1, 4  ;;  %s27_s14 = int_to_ptr.hbm [resolvable:$true] %s26_s14 }
   0x2   :  { %10 = vsyncpa [#allocation4], 0  ;;  %s439_s15 = smov [#allocation5]   ;;  %s16_s19 = sshll.u32 %s489_s0, 4  ;;  %s17_s19 = int_to_ptr.hbm [resolvable:$true] %s16_s19 }
   0x3   :  { %s28_s16 = sshll.u32 %s439_s15, 4  ;;  %s440_s20 = smov 128   ;;  %s29_s16 = int_to_ptr.vmem [resolvable:$true] %s28_s16 }
   0x4   :  { %s441_s21 = smov 8   ;;  %s442_s22 = smov [#allocation2]  }
   0x5   :  { %34 = dma.hbm_to_vmem [thread:$0]  %s27_s14, 1792, %s29_s16, [#allocation6], %s440_s20, %s440_s20, %s441_s21  }
   0x6   :  { %s18_s23 = sshll.u32 %s442_s22, 4  ;;  %s39_s26 = sshll.u32 %s491_s2, 4  ;;  %s19_s23 = int_to_ptr.vmem [resolvable:$true] %s18_s23  ;;  %s40_s26 = int_to_ptr.hbm [resolvable:$true] %s39_s26 }
   0x7   :  { %21 = dma.hbm_to_vmem [thread:$0]  %s17_s19, 64, %s19_s23, [#allocation3]  }
   0x8   :  { %s443_s1 = smov [#allocation7]  }
   0x9   :  { %s41_s27 = sshll.u32 %s443_s1, 4  ;;  %s42_s27 = int_to_ptr.vmem [resolvable:$true] %s41_s27 }
   0xa   :  { %47 = dma.hbm_to_vmem [thread:$0]  %s40_s26, 1536, %s42_s27, [#allocation6], %s440_s20, %s440_s20, %s441_s21  }
   0xb   :  { %433 = dma.done.wait [#allocation3], 64  }
   0xc   :  { %434 = vsyncadd [#allocation3], 4294967232 }
   0xd   :  { %435 = dma.done.wait [#allocation6], 3328  }
   0xe   :  { %436 = vsyncadd [#allocation6], 4294963968  ;;  %v444_v0 = vmov 0   ;;  %vm118_vm0 = vcmask 1043456   ;;  %vm105_vm1 = vcmask 31744   ;;  %v61_v2 = vld [vmem:[#allocation5] sm:$0xff] }
   0xf   :  { %335 = vset.pattern.permute.xlu1 %v444_v0  ;;  %334 = vset.pattern.permute.xlu0 %v444_v0  ;;  %v60_v1 = vld [vmem:[#allocation2] sm:$0xf]  ;;  %v76_v4 = vld [vmem:[#allocation7 + $0x18] sm:$0xff]  ;;  %v73_v5 = vld [vmem:[#allocation7] sm:$0xff]  ;;  %vm190_vm2 = vcmask 261120   ;;  %vm266_vm3 = vcmask 1041408  }
  0x10   :  { %336 = vset.pattern.permute.xlu2 %v444_v0  ;;  %v74_v3 = vld [vmem:[#allocation7 + $0x8] sm:$0xff]  ;;  %309 = vmatpush.msk.msra.mxu0 %vm118_vm0, %v60_v1  ;;  %v62_v6 = vld [vmem:[#allocation5 + $0x8] sm:$0xff]  ;;  %v75_v7 = vld [vmem:[#allocation7 + $0x10] sm:$0xff]  ;;  %vm262_vm4 = vcmask 408576   ;;  %s445_s0 = smov [#allocation8]   ;;  %s298_s30 = sshll.u32 %s492_s3, 4  ;;  %s299_s30 = int_to_ptr.hbm [resolvable:$true] %s298_s30 }
  0x11   :  { %92 = vperm.xlu1 %335, %v74_v3   ;;  %310 = vmatmul.msk.f32.vlgmr.msra.gmra.mxu0 %vm105_vm1, %v61_v2  ;;  %v80_v8 = vld [vmem:[#allocation7 + $0x38] sm:$0xff]  ;;  %v63_v9 = vld [vmem:[#allocation5 + $0x10] sm:$0xff]  ;;  %v64_v12 = vld [vmem:[#allocation5 + $0x18] sm:$0xff]  ;;  %s296_s2 = sshll.u32 %s445_s0, 4  ;;  %s297_s2 = int_to_ptr.vmem [resolvable:$true] %s296_s2 }
  0x12   :  { %102 = vperm.xlu0 %334, %v76_v4   ;;  %v81_v10 = vld [vmem:[#allocation7 + $0x40] sm:$0xff]  ;;  %v78_v13 = vld [vmem:[#allocation7 + $0x28] sm:$0xff]  ;;  %v83_v26 = vld [vmem:[#allocation7 + $0x50] sm:$0x3] }
  0x13   :  { %v77_v11 = vld [vmem:[#allocation7 + $0x20] sm:$0xff]  ;;  %187 = vperm.xlu2 %336, %v83_v26   ;;  %v65_v31 = vld [vmem:[#allocation5 + $0x20] sm:$0xff]  ;;  %v68_v32 = vld [vmem:[#allocation5 + $0x38] sm:$0xff] }
  0x14   :  { %v82_v33 = vld [vmem:[#allocation7 + $0x48] sm:$0xff]  ;;  %v66_v34 = vld [vmem:[#allocation5 + $0x28] sm:$0xff]  ;;  %v69_v35 = vld [vmem:[#allocation5 + $0x40] sm:$0xff] }
  0x15   :  { %v79_v36 = vld [vmem:[#allocation7 + $0x30] sm:$0xff]  ;;  %v70_v37 = vld [vmem:[#allocation5 + $0x48] sm:$0xff]  ;;  %v67_v38 = vld [vmem:[#allocation5 + $0x30] sm:$0xff] }
  0x16   :  { %v84_v39 = vld [vmem:[#allocation7 + $0x58] sm:$0x3]  ;;  %v71_v40 = vld [vmem:[#allocation5 + $0x50] sm:$0x3] }
  0x19   :  { %87 = vperm.xlu1 %335, %v73_v5   ;;  %311 = vmatmul.msk.f32.gmra.mxu0 %vm105_vm1, %v62_v6  ;;  %v72_v5 = vld [vmem:[#allocation5 + $0x60] sm:$0x3] }
  0x1a   :  { %97 = vperm.xlu0 %334, %v75_v7  }
  0x1b   :  { %182 = vperm.xlu2 %336, %v82_v33  }
  0x21   :  { %172 = vperm.xlu1 %335, %v80_v8   ;;  %312 = vmatmul.msk.f32.gmra.mxu0 %vm105_vm1, %v63_v9 }
  0x22   :  { %177 = vperm.xlu0 %334, %v81_v10  }
  0x23   :  { %167 = vperm.xlu2 %336, %v79_v36  }
  0x29   :  { %157 = vperm.xlu1 %335, %v77_v11   ;;  %313 = vmatmul.msk.f32.gmra.mxu0 %vm105_vm1, %v64_v12 }
  0x2a   :  { %162 = vperm.xlu0 %334, %v78_v13  }
  0x2b   :  { %259 = vperm.xlu2 %336, %v84_v39  }
  0x6d   :  { %v188_v43 = vpop.permute.xlu2 %187 }
  0x75   :  { %v183_v46 = vpop.permute.xlu2 %182 }
  0x7d   :  { %v168_v58 = vpop.permute.xlu2 %167 }
  0x83   :  { %v93_v17 = vpop.permute.xlu1 %92 }
  0x84   :  { %v103_v16 = vpop.permute.xlu0 %102 }
  0x85   :  { %v260_v6 = vpop.permute.xlu2 %259 }
  0x8b   :  { %v88_v23 = vpop.permute.xlu1 %87 }
  0x8c   :  { %v98_v19 = vpop.permute.xlu0 %97 }
  0x8e   :  { %v139_v14 = vpop.f32.mrf.mxu0 }
  0x8f   :  { %v140_v27 = vadd.f32 %v139_v14, %v88_v23 }
  0x91   :  { %v151_v30 = vmax.f32 %v140_v27, 0.0 }
  0x93   :  { %v173_v49 = vpop.permute.xlu1 %172 }
  0x94   :  { %v178_v48 = vpop.permute.xlu0 %177 }
  0x96   :  { %v142_v15 = vpop.f32.mrf.mxu0 }
  0x97   :  { %v143_v24 = vadd.f32 %v142_v15, %v93_v17 }
  0x99   :  { %v152_v29 = vmax.f32 %v143_v24, 0.0 }
  0x9b   :  { %v158_v0 = vpop.permute.xlu1 %157 }
  0x9c   :  { %v163_v61 = vpop.permute.xlu0 %162 }
  0x9e   :  { %v145_v18 = vpop.f32.mrf.mxu0 }
  0x9f   :  { %v146_v21 = vadd.f32 %v145_v18, %v98_v19 }
  0xa1   :  { %v153_v28 = vmax.f32 %v146_v21, 0.0 }
  0xa6   :  { %v148_v20 = vpop.f32.mrf.mxu0 }
  0xa7   :  { %v149_v22 = vadd.f32 %v148_v20, %v103_v16 }
  0xa9   :  { %v154_v25 = vmax.f32 %v149_v22, 0.0 }
  0xab   :  { %224 = vmatpush.msra.mxu1 %v154_v25  ;;  %323 = vmatpush.msra.mxu3 %v154_v25 }
  0xad   :  { %225 = vmatpush.msra.mxu1 %v153_v28  ;;  %324 = vmatpush.msra.mxu3 %v153_v28 }
  0xaf   :  { %226 = vmatpush.msra.mxu1 %v152_v29  ;;  %325 = vmatpush.msra.mxu3 %v152_v29 }
  0xb1   :  { %227 = vmatpush.msra.mxu1 %v151_v30  ;;  %326 = vmatpush.msra.mxu3 %v151_v30 }
  0xb2   :  { %314 = vmatmul.msk.f32.vlgmr.msra.gmra.mxu1 %vm190_vm2, %v65_v31  ;;  %317 = vmatmul.msk.f32.vlgmr.msra.gmra.mxu3 %vm190_vm2, %v68_v32 }
  0xba   :  { %315 = vmatmul.msk.f32.gmra.mxu1 %vm190_vm2, %v66_v34  ;;  %318 = vmatmul.msk.f32.gmra.mxu3 %vm190_vm2, %v69_v35 }
  0xc2   :  { %319 = vmatmul.msk.f32.gmra.mxu3 %vm190_vm2, %v70_v37  ;;  %316 = vmatmul.msk.f32.gmra.mxu1 %vm190_vm2, %v67_v38 }
  0xca   :  { %320 = vmatmul.msk.f32.gmra.mxu3 %vm190_vm2, %v71_v40 }
 0x12f   :  { %v229_v44 = vpop.f32.mrf.mxu1 }
 0x130   :  { %v230_v1 = vadd.f32 %v229_v44, %v158_v0 }
 0x132   :  { %v250_v4 = vmax.f32 %v230_v1, 0.0 }
 0x135   :  { %v238_v41 = vpop.f32.mrf.mxu3 }
 0x136   :  { %v239_v56 = vadd.f32 %v238_v41, %v173_v49 }
 0x137   :  { %v232_v47 = vpop.f32.mrf.mxu1 }
 0x138   :  { %v253_v62 = vmax.f32 %v239_v56, 0.0  ;;  %v233_v63 = vadd.f32 %v232_v47, %v163_v61 }
 0x13a   :  { %v251_v3 = vmax.f32 %v233_v63, 0.0 }
 0x13d   :  { %v241_v42 = vpop.f32.mrf.mxu3 }
 0x13e   :  { %v242_v53 = vadd.f32 %v241_v42, %v178_v48 }
 0x13f   :  { %v235_v55 = vpop.f32.mrf.mxu1 }
 0x140   :  { %v254_v59 = vmax.f32 %v242_v53, 0.0  ;;  %v236_v60 = vadd.f32 %v235_v55, %v168_v58 }
 0x142   :  { %v252_v2 = vmax.f32 %v236_v60, 0.0 }
 0x145   :  { %v244_v45 = vpop.f32.mrf.mxu3 }
 0x146   :  { %v245_v51 = vadd.f32 %v244_v45, %v183_v46 }
 0x148   :  { %v255_v57 = vmax.f32 %v245_v51, 0.0 }
 0x14d   :  { %v247_v50 = vpop.f32.mrf.mxu3 }
 0x14e   :  { %v248_v52 = vadd.f32 %v247_v50, %v188_v43 }
 0x150   :  { %v256_v54 = vmax.f32 %v248_v52, 0.0 }
 0x152   :  { %321 = vmatpush.msk.msra.mxu2 %vm266_vm3, %v256_v54 }
 0x154   :  { %280 = vmatpush.msra.mxu2 %v255_v57 }
 0x156   :  { %281 = vmatpush.msra.mxu2 %v254_v59 }
 0x158   :  { %282 = vmatpush.msra.mxu2 %v253_v62 }
 0x15a   :  { %283 = vmatpush.msra.mxu2 %v252_v2 }
 0x15c   :  { %284 = vmatpush.msra.mxu2 %v251_v3 }
 0x15e   :  { %285 = vmatpush.msra.mxu2 %v250_v4 }
 0x15f   :  { %322 = vmatmul.msk.f32.vlgmr.msra.gmra.mxu2 %vm262_vm4, %v72_v5 }
 0x1e2   :  { %v287_v7 = vpop.f32.mrf.mxu2 }
 0x1e3   :  { %v288_v8 = vadd.f32 %v287_v7, %v260_v6 }
 0x1e5   :  { %290 = vst [vmem:[#allocation8] sm:$0x3] %v288_v8 }
 0x1e6   :  { %301 = dma.vmem_to_hbm [thread:$0]  %s297_s2, 32, %s299_s30, [#allocation4]  }
 0x1e7   :  { %437 = dma.done.wait [#allocation4], 32  }
 0x1e8   :  { %438 = vsyncadd [#allocation4], 4294967264 }
 0x1e9   :  { %306 = vsyncpa [#allocation3], 1 }
 0x1ea   :  { %307 = vsyncpa [#allocation6], 1 }
 0x1eb   :  { %308 = vsyncpa [#allocation4], 1 }

</bundles_post_ra>
